<compile_context>
chip_gen: v7x
topology: tpu7x:2x2x1
jax: 0.10.0
libtpu: 0.0.40
codegen_flags: <defaults>
</compile_context>

<pallas_src>
import functools

import jax
import jax.numpy as jnp
from jax.experimental import pallas as pl
from jax.experimental.pallas import tpu as pltpu


def _mlp_kernel(num_hidden, tanh_dtype, tx_ref, small_ref, wh_ref, bh_ref, o_ref):
    tx = tx_ref[...]                               # [2, tm]  (batch on lanes)
    small = small_ref[...]                         # [H, 5]   packed small params
    t_row = tx[0:1, :]                             # [1, tm]
    x_row = tx[1:2, :]                             # [1, tm]
    w_t = small[:, 0:1]                            # [H, 1]
    w_x = small[:, 1:2]
    b0 = small[:, 2:3]
    wo_col = small[:, 3:4]
    bo = small[0:1, 4:5]                           # [1, 1]

    # First layer: K = 2 -> pure VPU broadcast FMAs, no MXU push.
    pre = w_t * t_row + w_x * x_row + b0                       # [H, tm]
    h = jnp.tanh(pre.astype(tanh_dtype)).astype(jnp.float32)

    # Hidden layers on the MXU: [H, H] @ [H, tm] -> [H, tm]  (static unroll).
    for l in range(num_hidden):
        pre = jnp.dot(wh_ref[l], h, preferred_element_type=jnp.float32) + bh_ref[l]
        h = jnp.tanh(pre.astype(tanh_dtype)).astype(jnp.float32)

    # Output layer (single output row): VPU multiply + sublane/XLU reduction
    # instead of a fill/drain-dominated [1, H] @ [H, tm] MXU matmul.
    o_ref[...] = (
        jnp.sum(wo_col * h, axis=0, keepdims=True) + bo
    ).astype(o_ref.dtype)


def _mlp_kernel_no_hidden(tanh_dtype, tx_ref, small_ref, o_ref):
    # hidden_layers == 1 path (no H->H linear layers).
    tx = tx_ref[...]
    small = small_ref[...]
    t_row = tx[0:1, :]
    x_row = tx[1:2, :]
    pre = small[:, 0:1] * t_row + small[:, 1:2] * x_row + small[:, 2:3]
    h = jnp.tanh(pre.astype(tanh_dtype)).astype(jnp.float32)
    o_ref[...] = (
        jnp.sum(small[:, 3:4] * h, axis=0, keepdims=True) + small[0:1, 4:5]
    ).astype(o_ref.dtype)


def _pick_tile(N):
    """Tile (lane) width selection.

    - N <= 512: one grid step (whole batch). Splitting tiny batches only adds
      per-step fixed cost on 1-TC chips, and on v7x the 2-TC split doesn't pay
      off until per-TC work is ~512+ lanes.
    - N > 512: cap tm at 512 (vreg-pressure: [H, tm] live f32 activation across
      the unrolled layer loop), picking the largest multiple-of-128 divisor.
    """
    if N <= 512 or N % 128 != 0:
        return N
    for cand in (512, 384, 256, 128):
        if N % cand == 0:
            return cand
    return N


def nn_burgers_forward(t, x, params, *, tm=None, tanh_dtype=jnp.float32):
    """Fused MLP forward: cat([t, x], dim=1) -> Linear/Tanh stack -> [N, 1].

    t, x: [N, 1] float32. params in PyTorch [out, in] layout (see init_params).
    """
    w0, b0, wh, bh, wo, bo = params
    N = t.shape[0]
    H = w0.shape[0]
    L = wh.shape[0]

    if tm is None:
        tm = _pick_tile(N)
    tm = min(tm, N)
    assert N % tm == 0, "batch must be divisible by the tile size"
    assert tm % 128 == 0 or tm == N, "tm must be a multiple of 128 (or equal N)"

    # Batch on lanes: pack t and x into one [2, N] slab -> one DMA per tile.
    tx = jnp.concatenate([t.reshape(1, N), x.reshape(1, N)], axis=0)

    # Pack the small parameters into one [H, 5] block (one DMA instead of 4):
    # columns = [w0_t, w0_x, b0, wo^T, bo (broadcast)].
    small = jnp.concatenate(
        [w0, b0, wo.T, jnp.broadcast_to(bo, (H, 1))], axis=1
    )

    n_steps = N // tm
    grid = (n_steps,)

    # Grid-invariant blocks: single-buffer them when the grid has >1 step so
    # constant weights are not double-buffered across iterations.
    const_kwargs = {"pipeline_mode": pl.Buffered(1)} if n_steps > 1 else {}

    def const(shape):
        return pl.BlockSpec(shape, lambda *_: (0,) * len(shape), **const_kwargs)

    row_spec = pl.BlockSpec((2, tm), lambda i: (0, i))
    out_spec = pl.BlockSpec((1, tm), lambda i: (0, i))   # lane-dense slab

    if L > 0:
        kernel = functools.partial(_mlp_kernel, L, tanh_dtype)
        in_specs = [
            row_spec,                 # packed [2, tm] t/x tile
            const((H, 5)),            # packed small params
            const((L, H, H)),         # hidden Ws
            const((L, H, 1)),         # hidden bs
        ]
        args = (tx, small, wh, bh)
    else:
        kernel = functools.partial(_mlp_kernel_no_hidden, tanh_dtype)
        in_specs = [row_spec, const((H, 5))]
        args = (tx, small)

    cost = pl.CostEstimate(
        flops=int(2 * N * (2 * H + L * H * H + H)),
        transcendentals=int(N * H * (L + 1)),
        bytes_accessed=int(4 * (3 * N + 5 * H + L * H * (H + 1))),
    )

    out_row = pl.pallas_call(
        kernel,
        out_shape=jax.ShapeDtypeStruct((1, N), t.dtype),
        grid_spec=pl.GridSpec(
            grid=grid,
            in_specs=in_specs,
            out_specs=out_spec,
        ),
        compiler_params=pltpu.CompilerParams(
            dimension_semantics=("parallel",),  # shards tiles across TCs on v7x
        ),
        cost_estimate=cost,
    )(*args)

    return out_row.reshape(N, 1)


def init_params(key, hidden_layers, hidden_width):
    """Deterministic init matching PyTorch nn.Linear ([out, in] layout)."""
    H = hidden_width
    L = hidden_layers - 1  # number of H->H hidden linear layers
    ks = jax.random.split(key, 6)

    def unif(k, shape, fan_in):
        bound = 1.0 / jnp.sqrt(fan_in)
        return jax.random.uniform(k, shape, jnp.float32, -bound, bound)

    w0 = unif(ks[0], (H, 2), 2.0)
    b0 = unif(ks[1], (H, 1), 2.0)
    if L > 0:
        wh = unif(ks[2], (L, H, H), float(H))
        bh = unif(ks[3], (L, H, 1), float(H))
    else:
        wh = jnp.zeros((0, H, H), jnp.float32)
        bh = jnp.zeros((0, H, 1), jnp.float32)
    wo = unif(ks[4], (1, H), float(H))
    bo = unif(ks[5], (1, 1), float(H))
    return (w0, b0, wh, bh, wo, bo)


def reference_forward(t, x, params):
    """Pure-JAX reference (batch-major) for correctness checking."""
    w0, b0, wh, bh, wo, bo = params
    h = jnp.tanh(jnp.concatenate([t, x], axis=1) @ w0.T + b0.T)   # [N, H]
    for l in range(wh.shape[0]):
        h = jnp.tanh(h @ wh[l].T + bh[l].T)
    return h @ wo.T + bo.T                                        # [N, 1]


if __name__ == "__main__":
    hidden_layers = 3
    hidden_width = 32
    N = 256  # number of collocation points (batch)

    key = jax.random.PRNGKey(0)
    kp, kt, kx = jax.random.split(key, 3)
    params = init_params(kp, hidden_layers, hidden_width)

    t = jax.random.uniform(kt, (N, 1), jnp.float32)                 # time coords
    x = jax.random.uniform(kx, (N, 1), jnp.float32, -1.0, 1.0)      # space coords

    out = nn_burgers_forward(t, x, params)
    out = jax.block_until_ready(out)

    ref = reference_forward(t, x, params)
    assert out.shape == (N, 1), out.shape
    assert jnp.allclose(out, ref, atol=1e-5, rtol=1e-5), "mismatch vs reference"

    print("KERNEL_OK")
</pallas_src>

<mosaic_0001>
module attributes {stable_mosaic.version = 11 : i64} {
  func.func @_mlp_kernel(%arg0: i32, %arg1: memref<2x256xf32, #tpu.memory_space<vmem>>, %arg2: memref<32x5xf32, #tpu.memory_space<vmem>>, %arg3: memref<2x32x32xf32, #tpu.memory_space<vmem>>, %arg4: memref<2x32x1xf32, #tpu.memory_space<vmem>>, %arg5: memref<1x256xf32, #tpu.memory_space<vmem>>) attributes {dimension_semantics = [#tpu.dimension_semantics<parallel>], iteration_bounds = array<i64: 1>, scalar_prefetch = 0 : i64, scratch_operands = 0 : i64, tpu.core_type = #tpu.core_type<tc>, window_params = [{transform_indices = @transform_0, window_bounds = array<i64: 2, 256>}, {pipeline_mode = #tpu.pipeline_mode<synchronous>, transform_indices = @transform_1, window_bounds = array<i64: 32, 5>}, {pipeline_mode = #tpu.pipeline_mode<synchronous>, transform_indices = @transform_2, window_bounds = array<i64: 2, 32, 32>}, {pipeline_mode = #tpu.pipeline_mode<synchronous>, transform_indices = @transform_3, window_bounds = array<i64: 2, 32, 1>}, {transform_indices = @transform_4, window_bounds = array<i64: 1, 256>}]} {
    %c0 = arith.constant 0 : index
    %c0_0 = arith.constant 0 : index
    %0 = vector.load %arg1[%c0, %c0_0] : memref<2x256xf32, #tpu.memory_space<vmem>>, vector<2x256xf32>
    %c0_1 = arith.constant 0 : index
    %c0_2 = arith.constant 0 : index
    %1 = vector.load %arg2[%c0_1, %c0_2] : memref<32x5xf32, #tpu.memory_space<vmem>>, vector<32x5xf32>
    %2 = vector.extract_strided_slice %0 {offsets = [0, 0], sizes = [1, 256], strides = [1, 1]} : vector<2x256xf32> to vector<1x256xf32>
    %3 = vector.extract_strided_slice %0 {offsets = [1, 0], sizes = [1, 256], strides = [1, 1]} : vector<2x256xf32> to vector<1x256xf32>
    %4 = vector.extract_strided_slice %1 {offsets = [0, 0], sizes = [32, 1], strides = [1, 1]} : vector<32x5xf32> to vector<32x1xf32>
    %5 = vector.extract_strided_slice %1 {offsets = [0, 1], sizes = [32, 1], strides = [1, 1]} : vector<32x5xf32> to vector<32x1xf32>
    %6 = vector.extract_strided_slice %1 {offsets = [0, 2], sizes = [32, 1], strides = [1, 1]} : vector<32x5xf32> to vector<32x1xf32>
    %7 = vector.extract_strided_slice %1 {offsets = [0, 3], sizes = [32, 1], strides = [1, 1]} : vector<32x5xf32> to vector<32x1xf32>
    %8 = vector.extract_strided_slice %1 {offsets = [0, 4], sizes = [1, 1], strides = [1, 1]} : vector<32x5xf32> to vector<1x1xf32>
    %9 = vector.broadcast %4 : vector<32x1xf32> to vector<32x256xf32>
    %10 = vector.broadcast %2 : vector<1x256xf32> to vector<32x256xf32>
    %11 = arith.mulf %9, %10 : vector<32x256xf32>
    %12 = vector.broadcast %5 : vector<32x1xf32> to vector<32x256xf32>
    %13 = vector.broadcast %3 : vector<1x256xf32> to vector<32x256xf32>
    %14 = arith.mulf %12, %13 : vector<32x256xf32>
    %15 = arith.addf %11, %14 : vector<32x256xf32>
    %16 = vector.broadcast %6 : vector<32x1xf32> to vector<32x256xf32>
    %17 = arith.addf %15, %16 : vector<32x256xf32>
    %18 = math.tanh %17 : vector<32x256xf32>
    %c0_3 = arith.constant 0 : index
    %c0_4 = arith.constant 0 : index
    %c0_5 = arith.constant 0 : index
    %19 = vector.load %arg3[%c0_3, %c0_4, %c0_5] : memref<2x32x32xf32, #tpu.memory_space<vmem>>, vector<1x32x32xf32>
    %20 = vector.shape_cast %19 : vector<1x32x32xf32> to vector<32x32xf32>
    %cst = arith.constant dense<0.000000e+00> : vector<32x256xf32>
    %21 = tpu.matmul %20, %18, %cst {dimension_numbers = #tpu.dot_dimension_numbers<[1], [0], [0], [1], [0, 0, 1, 1], [], []>} : vector<32x32xf32>, vector<32x256xf32>, vector<32x256xf32> -> vector<32x256xf32>
    %c0_6 = arith.constant 0 : index
    %c0_7 = arith.constant 0 : index
    %c0_8 = arith.constant 0 : index
    %22 = vector.load %arg4[%c0_6, %c0_7, %c0_8] : memref<2x32x1xf32, #tpu.memory_space<vmem>>, vector<1x32x1xf32>
    %23 = vector.shape_cast %22 : vector<1x32x1xf32> to vector<32x1xf32>
    %24 = vector.broadcast %23 : vector<32x1xf32> to vector<32x256xf32>
    %25 = arith.addf %21, %24 : vector<32x256xf32>
    %26 = math.tanh %25 : vector<32x256xf32>
    %c1 = arith.constant 1 : index
    %c0_9 = arith.constant 0 : index
    %c0_10 = arith.constant 0 : index
    %27 = vector.load %arg3[%c1, %c0_9, %c0_10] : memref<2x32x32xf32, #tpu.memory_space<vmem>>, vector<1x32x32xf32>
    %28 = vector.shape_cast %27 : vector<1x32x32xf32> to vector<32x32xf32>
    %cst_11 = arith.constant dense<0.000000e+00> : vector<32x256xf32>
    %29 = tpu.matmul %28, %26, %cst_11 {dimension_numbers = #tpu.dot_dimension_numbers<[1], [0], [0], [1], [0, 0, 1, 1], [], []>} : vector<32x32xf32>, vector<32x256xf32>, vector<32x256xf32> -> vector<32x256xf32>
    %c1_12 = arith.constant 1 : index
    %c0_13 = arith.constant 0 : index
    %c0_14 = arith.constant 0 : index
    %30 = vector.load %arg4[%c1_12, %c0_13, %c0_14] : memref<2x32x1xf32, #tpu.memory_space<vmem>>, vector<1x32x1xf32>
    %31 = vector.shape_cast %30 : vector<1x32x1xf32> to vector<32x1xf32>
    %32 = vector.broadcast %31 : vector<32x1xf32> to vector<32x256xf32>
    %33 = arith.addf %29, %32 : vector<32x256xf32>
    %34 = math.tanh %33 : vector<32x256xf32>
    %35 = vector.broadcast %7 : vector<32x1xf32> to vector<32x256xf32>
    %36 = arith.mulf %35, %34 : vector<32x256xf32>
    %cst_15 = arith.constant dense<0.000000e+00> : vector<256xf32>
    %37 = vector.multi_reduction <add>, %36, %cst_15 [0] : vector<32x256xf32> to vector<256xf32>
    %38 = vector.shape_cast %37 : vector<256xf32> to vector<1x256xf32>
    %39 = vector.broadcast %8 : vector<1x1xf32> to vector<1x256xf32>
    %40 = arith.addf %38, %39 : vector<1x256xf32>
    %c0_16 = arith.constant 0 : index
    %c0_17 = arith.constant 0 : index
    %41 = vector.load %arg5[%c0_16, %c0_17] : memref<1x256xf32, #tpu.memory_space<vmem>>, vector<1x256xf32>
    tpu.vector_store %arg5[%c0_16, %c0_17], %40 {strides = array<i32>} : memref<1x256xf32, #tpu.memory_space<vmem>>, vector<1x256xf32>,
    return
  }
  func.func @transform_0(%arg0: i32) -> (i32, i32) {
    %c0_i32 = arith.constant 0 : i32
    %c0_i32_0 = arith.constant 0 : i32
    return %c0_i32, %arg0 : i32, i32
  }
  func.func @transform_1(%arg0: i32) -> (i32, i32) {
    %c0_i32 = arith.constant 0 : i32
    %c0_i32_0 = arith.constant 0 : i32
    %c0_i32_1 = arith.constant 0 : i32
    return %c0_i32, %c0_i32_0 : i32, i32
  }
  func.func @transform_2(%arg0: i32) -> (i32, i32, i32) {
    %c0_i32 = arith.constant 0 : i32
    %c0_i32_0 = arith.constant 0 : i32
    %c0_i32_1 = arith.constant 0 : i32
    %c0_i32_2 = arith.constant 0 : i32
    return %c0_i32, %c0_i32_0, %c0_i32_1 : i32, i32, i32
  }
  func.func @transform_3(%arg0: i32) -> (i32, i32, i32) {
    %c0_i32 = arith.constant 0 : i32
    %c0_i32_0 = arith.constant 0 : i32
    %c0_i32_1 = arith.constant 0 : i32
    %c0_i32_2 = arith.constant 0 : i32
    return %c0_i32, %c0_i32_0, %c0_i32_1 : i32, i32, i32
  }
  func.func @transform_4(%arg0: i32) -> (i32, i32) {
    %c0_i32 = arith.constant 0 : i32
    %c0_i32_0 = arith.constant 0 : i32
    return %c0_i32, %arg0 : i32, i32
  }
}

</mosaic_0001>

<bundles_post_ra>
// kernel: tpu_custom_call.1
= control target key start
LH: loop header
LB: loop body
LE: loop exit
PB: predicated region body
PF: predicated region fallthrough
CT: control target
= control target key end

     0   :  { %v638_v1 = vmov 1   ;;  %v639_v2 = vmov 0   ;;  %s796_s0 = inlined_call_operand.vmem [shape: f32[2,256], index: 0, kind: input, shape index: {}]   ;;  %s797_s1 = inlined_call_operand.vmem [shape: f32[32,5], index: 1, kind: input, shape index: {}]   ;;  %s798_s2 = inlined_call_operand.vmem [shape: f32[2,32,32], index: 2, kind: input, shape index: {}]   ;;  %s799_s3 = inlined_call_operand.vmem [shape: f32[2,32,1], index: 3, kind: input, shape index: {}]   ;;  %s800_s4 = inlined_call_operand.hbm [shape: f32[1,256], index: 4, kind: output, shape index: {}]  }
   0x1   :  { %v674_v0 = vld [vmem:[%s797_s1] sm:$0xff]  ;;  %555 = vset.pattern.permute.xlu1 %v638_v1  ;;  %554 = vset.pattern.permute.xlu0 %v639_v2 }
   0x2   :  { %9 = vsyncpa [#allocation3], 0  ;;  %71 = vperm.xlu1 %555, %v674_v0   ;;  %25 = vperm.xlu0 %554, %v674_v0   ;;  %v681_v3 = vld [vmem:[%s797_s1 + $0x8] sm:$0xff]  ;;  %v688_v4 = vld [vmem:[%s797_s1 + $0x10] sm:$0xff]  ;;  %v640_v6 = vmov 2   ;;  %v641_v7 = vmov 0.0   ;;  %v44_v16 = vlaneseq }
   0x3   :  { %v693_v5 = vld [vmem:[%s797_s1 + $0x18] sm:$0xff]  ;;  %257 = vmatprep.mubr.f32.mxu0 %v641_v7  ;;  %396 = vmatprep.mubr.f32.mxu1 %v641_v7  ;;  %v157_v8 = vld [vmem:[%s799_s3 + $0x8] sm:$0xff]  ;;  %v156_v9 = vld [vmem:[%s799_s3] sm:$0xff]  ;;  %vm180_vm0 = vcmask 261120  }
   0x4   :  { %v158_v10 = vld [vmem:[%s799_s3 + $0x10] sm:$0xff]  ;;  %v159_v11 = vld [vmem:[%s799_s3 + $0x18] sm:$0xff]  ;;  %v522_v12 = vld [vmem:[%s799_s3 + $0x20] sm:$0xff]  ;;  %v730_v17 = vshrl.u32 %v44_v16, 7  ;;  %vm497_vm1 = vcmp.lt.s32.totalorder %v44_v16, 256 }
   0x5   :  { %v523_v13 = vld [vmem:[%s799_s3 + $0x28] sm:$0xff]  ;;  %v524_v14 = vld [vmem:[%s799_s3 + $0x30] sm:$0xff]  ;;  %v525_v15 = vld [vmem:[%s799_s3 + $0x38] sm:$0xff] }
   0x6   :  { %75 = vperm.xlu1 %555, %v681_v3   ;;  %30 = vperm.xlu0 %554, %v681_v3   ;;  %v88_v20 = vsub.s32 1, %v730_v17  ;;  %v92_v21 = vsub.s32 3, %v730_v17  ;;  %v46_v22 = vsub.s32 0, %v730_v17  ;;  %v50_v23 = vsub.s32 2, %v730_v17  ;;  %v18_v24 = vld [vmem:[%s796_s0] sm:$0xf] }
   0x8   :  { %v89_v27 = vrot.slane %v18_v24, %v88_v20  ;;  %v93_v28 = vrot.slane %v18_v24, %v92_v21  ;;  %v47_v29 = vrot.slane %v18_v24, %v46_v22  ;;  %v51_v30 = vrot.slane %v18_v24, %v50_v23 }
   0xa   :  { %556 = vset.pattern.permute.xlu1 %v639_v2  ;;  %35 = vperm.xlu0 %554, %v688_v4   ;;  %v99_v33 = vrot.slane %v89_v27, %v88_v20  ;;  %v103_v34 = vrot.slane %v93_v28, %v88_v20  ;;  %v57_v35 = vrot.slane %v47_v29, %v46_v22 }
   0xb   :  { %40 = vperm.xlu1 %556, %v693_v5   ;;  %v61_v36 = vrot.slane %v51_v30, %v46_v22  ;;  %v152_v30 = vld [vmem:[%s798_s2] sm:$0xff] }
   0xe   :  { %557 = vset.pattern.permute.xlu0 %v638_v1 }
   0xf   :  { %558 = vset.pattern.permute.xlu1 %v638_v1  ;;  %79 = vperm.xlu0 %557, %v688_v4  }
  0x10   :  { %83 = vperm.xlu1 %558, %v693_v5  }
  0x13   :  { %560 = vset.pattern.permute.xlu0 %v640_v6 }
  0x14   :  { %559 = vset.pattern.permute.xlu1 %v640_v6  ;;  %125 = vperm.xlu0 %560, %v681_v3  }
  0x15   :  { %121 = vperm.xlu1 %559, %v674_v0  }
  0x18   :  { %561 = vset.pattern.permute.xlu0 %v639_v2 }
  0x19   :  { %129 = vperm.xlu1 %559, %v688_v4   ;;  %162 = vperm.xlu0 %561, %v156_v9  }
  0x1d   :  { %133 = vperm.xlu1 %559, %v693_v5   ;;  %177 = vperm.xlu0 %561, %v159_v11  }
  0x21   :  { %562 = vset.pattern.permute.xlu1 %v639_v2  ;;  %307 = vperm.xlu0 %561, %v523_v13  }
  0x22   :  { %167 = vperm.xlu1 %562, %v157_v8  }
  0x25   :  { %317 = vperm.xlu0 %561, %v525_v15  }
  0x26   :  { %172 = vperm.xlu1 %562, %v158_v10  }
  0x2a   :  { %302 = vperm.xlu1 %562, %v522_v12  }
  0x2e   :  { %312 = vperm.xlu1 %562, %v524_v14  }
  0x81   :  { %v72_v18 = vpop.permute.xlu1 %71  ;;  %v26_v19 = vpop.permute.xlu0 %25 }
  0x82   :  { %v104_v42 = vmul.f32 %v99_v33, %v72_v18  ;;  %v105_v43 = vmul.f32 %v103_v34, %v72_v18  ;;  %v62_v44 = vmul.f32 %v57_v35, %v26_v19  ;;  %v63_v45 = vmul.f32 %v61_v36, %v26_v19 }
  0x84   :  { %v112_v51 = vadd.f32 %v104_v42, %v62_v44  ;;  %v113_v52 = vadd.f32 %v105_v43, %v63_v45 }
  0x85   :  { %v76_v25 = vpop.permute.xlu1 %75  ;;  %v31_v26 = vpop.permute.xlu0 %30 }
  0x86   :  { %v106_v37 = vmul.f32 %v99_v33, %v76_v25  ;;  %v107_v38 = vmul.f32 %v103_v34, %v76_v25  ;;  %v64_v39 = vmul.f32 %v57_v35, %v31_v26  ;;  %v65_v40 = vmul.f32 %v61_v36, %v31_v26 }
  0x88   :  { %v114_v47 = vadd.f32 %v106_v37, %v64_v39  ;;  %v115_v48 = vadd.f32 %v107_v38, %v65_v40 }
  0x89   :  { %v36_v31 = vpop.permute.xlu0 %35 }
  0x8a   :  { %v41_v32 = vpop.permute.xlu1 %40  ;;  %v66_v57 = vmul.f32 %v57_v35, %v36_v31  ;;  %v67_v60 = vmul.f32 %v61_v36, %v36_v31  ;;  %v153_v31 = vld [vmem:[%s798_s2 + $0x8] sm:$0xff] }
  0x8b   :  { %v68_v6 = vmul.f32 %v57_v35, %v41_v32  ;;  %v69_v8 = vmul.f32 %v61_v36, %v41_v32  ;;  %v154_v32 = vld [vmem:[%s798_s2 + $0x10] sm:$0xff]  ;;  %v643_v35 = vmov 4  }
  0x8e   :  { %v80_v41 = vpop.permute.xlu0 %79 }
  0x8f   :  { %v84_v46 = vpop.permute.xlu1 %83  ;;  %v108_v49 = vmul.f32 %v99_v33, %v80_v41  ;;  %v109_v53 = vmul.f32 %v103_v34, %v80_v41 }
  0x90   :  { %v110_v61 = vmul.f32 %v99_v33, %v84_v46  ;;  %v111_v62 = vmul.f32 %v103_v34, %v84_v46  ;;  %v155_v33 = vld [vmem:[%s798_s2 + $0x18] sm:$0xff]  ;;  %v642_v34 = vmov 3  }
  0x91   :  { %v116_v63 = vadd.f32 %v108_v49, %v66_v57  ;;  %v117_v2 = vadd.f32 %v109_v53, %v67_v60  ;;  %563 = vset.pattern.permute.xlu1 %v642_v34  ;;  %564 = vset.pattern.permute.xlu0 %v642_v34 }
  0x92   :  { %v118_v11 = vadd.f32 %v110_v61, %v68_v6  ;;  %v119_v12 = vadd.f32 %v111_v62, %v69_v8  ;;  %430 = vperm.xlu1 %563, %v674_v0   ;;  %434 = vperm.xlu0 %564, %v681_v3   ;;  %v520_v6 = vld [vmem:[%s798_s2 + $0x30] sm:$0xff]  ;;  %v521_v8 = vld [vmem:[%s798_s2 + $0x38] sm:$0xff] }
  0x93   :  { %v126_v50 = vpop.permute.xlu0 %125 }
  0x94   :  { %v138_v54 = vadd.f32 %v126_v50, %v114_v47  ;;  %v139_v55 = vadd.f32 %v126_v50, %v115_v48  ;;  %v122_v56 = vpop.permute.xlu1 %121 }
  0x95   :  { %v136_v58 = vadd.f32 %v122_v56, %v112_v51  ;;  %v137_v59 = vadd.f32 %v122_v56, %v113_v52 }
  0x96   :  { %566 = vtanh.f32 %v138_v54  ;;  %438 = vperm.xlu1 %563, %v688_v4   ;;  %565 = vset.pattern.permute.xlu0 %v643_v35 }
  0x97   :  { %568 = vtanh.f32 %v139_v55  ;;  %472 = vperm.xlu0 %565, %v674_v0  }
  0x98   :  { %570 = vtanh.f32 %v136_v58  ;;  %v130_v1 = vpop.permute.xlu1 %129  ;;  %v163_v36 = vpop.permute.xlu0 %162 }
  0x99   :  { %572 = vtanh.f32 %v137_v59  ;;  %v140_v9 = vadd.f32 %v130_v1, %v116_v63  ;;  %v141_v10 = vadd.f32 %v130_v1, %v117_v2  ;;  %v518_v1 = vld [vmem:[%s798_s2 + $0x20] sm:$0xff]  ;;  %v519_v2 = vld [vmem:[%s798_s2 + $0x28] sm:$0xff]  ;;  %s645_s2 = smov [#allocation2]  }
  0x9a   :  { %442 = vperm.xlu1 %563, %v693_v5   ;;  %s506_s27 = sshll.u32 %s645_s2, 4  ;;  %s507_s27 = int_to_ptr.vmem [resolvable:$true] %s506_s27 }
  0x9b   :  { %574 = vtanh.f32 %v140_v9  ;;  %s614_s28 = scalar_lea.vmem %s507_s27, 32  ;;  %p619_p1 = scmp.lt.s32.totalorder %s507_s27, %s507_s27 }
  0x9c   :  { %v134_v13 = vpop.permute.xlu1 %133  ;;  %576 = vtanh.f32 %v141_v10  ;;  %v178_v5 = vpop.permute.xlu0 %177  ;;  %p615_p0 = scmp.ne.s32.totalorder %s507_s27, %s614_s28  ;;  %p620_p2 = scmp.lt.s32.totalorder %s614_s28, %s614_s28 }
  0x9d   :  { %v142_v14 = vadd.f32 %v134_v13, %v118_v11  ;;  %v143_v15 = vadd.f32 %v134_v13, %v119_v12 }
  0x9e   :  { %p621_p3 = por %p620_p2, %p619_p1 }
  0x9f   :  { %578 = vtanh.f32 %v142_v14 }
  0xa0   :  { %v567_v18 = vpop.eup %566  ;;  %580 = vtanh.f32 %v143_v15  ;;  %v308_v14 = vpop.permute.xlu0 %307  ;;  %p622_p4 = pnand %p621_p3, %p615_p0 }
  0xa1   :  { %v569_v19 = vpop.eup %568  ;;  %v168_v40 = vpop.permute.xlu1 %167 }
  0xa2   :  { %v571_v20 = vpop.eup %570 }
  0xa3   :  { %v573_v21 = vpop.eup %572  ;;  %v532_v22 = vpack.c.bf16 %v567_v18, %v571_v20 }
  0xa4   :  { %v530_v23 = vpack.c.bf16 %v569_v19, %v573_v21 }
  0xa5   :  { %v575_v24 = vpop.eup %574  ;;  %v173_v4 = vpop.permute.xlu1 %172 }
  0xa6   :  { %531 = vmatprep.subr.bf16.mxu0 %v530_v23  ;;  %v577_v25 = vpop.eup %576 }
  0xa7   :  { %533 = vmatpush1.bf16.msra.mxu0 %v532_v22 }
  0xa9   :  { %v579_v26 = vpop.eup %578  ;;  %v303_v9 = vpop.permute.xlu1 %302 }
  0xaa   :  { %v581_v27 = vpop.eup %580  ;;  %v536_v28 = vpack.c.bf16 %v579_v26, %v575_v24 }
  0xab   :  { %v534_v29 = vpack.c.bf16 %v581_v27, %v577_v25  ;;  %v318_v25 = vpop.permute.xlu0 %317 }
  0xad   :  { %535 = vmatprep.subr.bf16.mxu0 %v534_v29 }
  0xae   :  { %537 = vmatpush1.bf16.msra.mxu0 %v536_v28 }
  0xb1   :  { %514 = vmatmul.mubr.msk.f32.vlgmr.msra.gmra.mrb[0].mxu0 %vm180_vm0, %v152_v30 }
  0xb2   :  { %263 = vmatprep.mubr.f32.mxu0 %v641_v7 }
  0xb5   :  { %515 = vmatmul.mubr.msk.f32.gmra.mrb[2].mxu0 %vm180_vm0, %v153_v31 }
  0xb6   :  { %269 = vmatprep.mubr.f32.mxu0 %v641_v7 }
  0xb9   :  { %516 = vmatmul.mubr.msk.f32.gmra.mrb[4].mxu0 %vm180_vm0, %v154_v32 }
  0xba   :  { %275 = vmatprep.mubr.f32.mxu0 %v641_v7 }
  0xbd   :  { %517 = vmatmul.mubr.msk.f32.gmra.mrb[6].mxu0 %vm180_vm0, %v155_v33 }
 0x111   :  { %v435_v32 = vpop.permute.xlu0 %434 }
 0x184   :  { %v259_v37 = vpop.f32.mrb[0].mxu0 }
 0x185   :  { %v260_v38 = vadd.f32 %v259_v37, %v163_v36  ;;  %v261_v39 = vpop.f32.mrb[1].mxu0 }
 0x186   :  { %v262_v41 = vadd.f32 %v261_v39, %v163_v36 }
 0x187   :  { %582 = vtanh.f32 %v260_v38 }
 0x188   :  { %v265_v42 = vpop.f32.mrb[2].mxu0  ;;  %584 = vtanh.f32 %v262_v41 }
 0x189   :  { %v266_v43 = vadd.f32 %v265_v42, %v168_v40  ;;  %v267_v44 = vpop.f32.mrb[3].mxu0 }
 0x18a   :  { %v268_v3 = vadd.f32 %v267_v44, %v168_v40 }
 0x18b   :  { %586 = vtanh.f32 %v266_v43 }
 0x18c   :  { %588 = vtanh.f32 %v268_v3  ;;  %v271_v45 = vpop.f32.mrb[4].mxu0 }
 0x18d   :  { %v272_v46 = vadd.f32 %v271_v45, %v173_v4  ;;  %v273_v0 = vpop.f32.mrb[5].mxu0 }
 0x18e   :  { %v274_v47 = vadd.f32 %v273_v0, %v173_v4 }
 0x18f   :  { %590 = vtanh.f32 %v272_v46 }
 0x190   :  { %v277_v48 = vpop.f32.mrb[6].mxu0  ;;  %592 = vtanh.f32 %v274_v47 }
 0x191   :  { %v278_v49 = vadd.f32 %v277_v48, %v178_v5  ;;  %v279_v50 = vpop.f32.mrb[7].mxu0  ;;  %v583_v52 = vpop.eup %582 }
 0x192   :  { %v280_v51 = vadd.f32 %v279_v50, %v178_v5  ;;  %v585_v53 = vpop.eup %584 }
 0x193   :  { %594 = vtanh.f32 %v278_v49 }
 0x194   :  { %596 = vtanh.f32 %v280_v51 }
 0x195   :  { %v587_v54 = vpop.eup %586 }
 0x196   :  { %v589_v55 = vpop.eup %588  ;;  %v540_v56 = vpack.c.bf16 %v587_v54, %v583_v52 }
 0x197   :  { %v538_v57 = vpack.c.bf16 %v589_v55, %v585_v53 }
 0x199   :  { %539 = vmatprep.subr.bf16.mxu1 %v538_v57  ;;  %v591_v58 = vpop.eup %590  ;;  %v644_v57 = vmov 1966171168  }
 0x19a   :  { %541 = vmatpush1.bf16.msra.mxu1 %v540_v56  ;;  %v593_v59 = vpop.eup %592 }
 0x19d   :  { %v595_v60 = vpop.eup %594 }
 0x19e   :  { %v597_v61 = vpop.eup %596  ;;  %v544_v62 = vpack.c.bf16 %v595_v60, %v591_v58  ;;  %v481_v58 = vunpack.c.l.s4 %v644_v57 }
 0x19f   :  { %v542_v63 = vpack.c.bf16 %v597_v61, %v593_v59 }
 0x1a1   :  { %543 = vmatprep.subr.bf16.mxu1 %v542_v63  ;;  %v482_v63 = vunpack.c.0.s8 %v481_v58 }
 0x1a2   :  { %545 = vmatpush1.bf16.msra.mxu1 %v544_v62 }
 0x1a5   :  { %526 = vmatmul.mubr.msk.f32.vlgmr.msra.gmra.mrb[0].mxu1 %vm180_vm0, %v518_v1  ;;  %v473_v1 = vpop.permute.xlu0 %472 }
 0x1a6   :  { %402 = vmatprep.mubr.f32.mxu1 %v641_v7 }
 0x1a9   :  { %527 = vmatmul.mubr.msk.f32.gmra.mrb[2].mxu1 %vm180_vm0, %v519_v2 }
 0x1aa   :  { %408 = vmatprep.mubr.f32.mxu1 %v641_v7 }
 0x1ad   :  { %528 = vmatmul.mubr.msk.f32.gmra.mrb[4].mxu1 %vm180_vm0, %v520_v6 }
 0x1ae   :  { %414 = vmatprep.mubr.f32.mxu1 %v641_v7  ;;  %v313_v7 = vpop.permute.xlu1 %312 }
 0x1b1   :  { %529 = vmatmul.mubr.msk.f32.gmra.mrb[6].mxu1 %vm180_vm0, %v521_v8 }
 0x1b2   :  { %v431_v27 = vpop.permute.xlu1 %430 }
 0x1b6   :  { %v439_v39 = vpop.permute.xlu1 %438 }
 0x1ba   :  { %v443_v0 = vpop.permute.xlu1 %442 }
 0x278   :  { %v398_v10 = vpop.f32.mrb[0].mxu1 }
 0x279   :  { %v399_v11 = vadd.f32 %v398_v10, %v303_v9  ;;  %v400_v12 = vpop.f32.mrb[1].mxu1  ;;  %v485_v10 = vsub.s32 %v482_v63, %v730_v17 }
 0x27a   :  { %v401_v13 = vadd.f32 %v400_v12, %v303_v9 }
 0x27b   :  { %598 = vtanh.f32 %v399_v11 }
 0x27c   :  { %v404_v15 = vpop.f32.mrb[2].mxu1  ;;  %600 = vtanh.f32 %v401_v13 }
 0x27d   :  { %v405_v18 = vadd.f32 %v404_v15, %v308_v14  ;;  %v406_v19 = vpop.f32.mrb[3].mxu1 }
 0x27e   :  { %v407_v20 = vadd.f32 %v406_v19, %v308_v14 }
 0x27f   :  { %602 = vtanh.f32 %v405_v18 }
 0x280   :  { %604 = vtanh.f32 %v407_v20  ;;  %v410_v21 = vpop.f32.mrb[4].mxu1 }
 0x281   :  { %v411_v22 = vadd.f32 %v410_v21, %v313_v7  ;;  %v412_v23 = vpop.f32.mrb[5].mxu1 }
 0x282   :  { %v413_v24 = vadd.f32 %v412_v23, %v313_v7 }
 0x283   :  { %606 = vtanh.f32 %v411_v22 }
 0x284   :  { %608 = vtanh.f32 %v413_v24  ;;  %v416_v26 = vpop.f32.mrb[6].mxu1 }
 0x285   :  { %v417_v28 = vadd.f32 %v416_v26, %v318_v25  ;;  %v418_v29 = vpop.f32.mrb[7].mxu1  ;;  %v599_v31 = vpop.eup %598 }
 0x286   :  { %v419_v30 = vadd.f32 %v418_v29, %v318_v25  ;;  %v601_v33 = vpop.eup %600  ;;  %v445_v36 = vmul.f32 %v599_v31, %v431_v27 }
 0x287   :  { %610 = vtanh.f32 %v417_v28  ;;  %v446_v38 = vmul.f32 %v601_v33, %v431_v27 }
 0x288   :  { %612 = vtanh.f32 %v419_v30 }
 0x289   :  { %v603_v34 = vpop.eup %602 }
 0x28a   :  { %v605_v35 = vpop.eup %604  ;;  %v447_v37 = vmul.f32 %v603_v34, %v435_v32 }
 0x28b   :  { %v448_v40 = vmul.f32 %v605_v35, %v435_v32 }
 0x28c   :  { %v453_v41 = vadd.f32 %v447_v37, %v445_v36 }
 0x28d   :  { %v607_v42 = vpop.eup %606  ;;  %v462_v43 = vadd.f32 %v448_v40, %v446_v38 }
 0x28e   :  { %v609_v44 = vpop.eup %608  ;;  %v449_v3 = vmul.f32 %v607_v42, %v439_v39 }
 0x28f   :  { %v450_v4 = vmul.f32 %v609_v44, %v439_v39 }
 0x290   :  { %v454_v45 = vadd.f32 %v453_v41, %v449_v3 }
 0x291   :  { %v611_v46 = vpop.eup %610  ;;  %v463_v47 = vadd.f32 %v462_v43, %v450_v4 }
 0x292   :  { %v613_v5 = vpop.eup %612  ;;  %v451_v48 = vmul.f32 %v611_v46, %v443_v0 }
 0x293   :  { %v452_v49 = vmul.f32 %v613_v5, %v443_v0 }
 0x294   :  { %v455_v50 = vadd.f32 %v454_v45, %v451_v48 }
 0x295   :  { %v464_v51 = vadd.f32 %v463_v47, %v452_v49 }
 0x296   :  { %v456_v52 = vrot.slane %v455_v50, 4 }
 0x297   :  { %v465_v53 = vrot.slane %v464_v51, 4 }
 0x298   :  { %v457_v54 = vadd.f32 %v456_v52, %v455_v50 }
 0x299   :  { %v466_v55 = vadd.f32 %v465_v53, %v464_v51 }
 0x29a   :  { %v458_v56 = vrot.slane %v457_v54, 2 }
 0x29b   :  { %v467_v59 = vrot.slane %v466_v55, 2 }
 0x29c   :  { %v459_v60 = vadd.f32 %v458_v56, %v457_v54 }
 0x29d   :  { %v468_v61 = vadd.f32 %v467_v59, %v466_v55 }
 0x29e   :  { %v460_v62 = vrot.slane %v459_v60, 1 }
 0x29f   :  { %v469_v2 = vrot.slane %v468_v61, 1 }
 0x2a0   :  { %v461_v6 = vadd.f32 %v460_v62, %v459_v60 }
 0x2a1   :  { %v470_v8 = vadd.f32 %v469_v2, %v468_v61 }
 0x2a2   :  { %v475_v9 = vadd.f32 %v473_v1, %v461_v6 }
 0x2a3   :  { %v476_v11 = vadd.f32 %v473_v1, %v470_v8 }
 0x2a5   :  { %v479_v12 = vcombine.low %v475_v9, %v476_v11 }
 0x2a7   :  { %v486_v13 = vrot.slane %v479_v12, %v485_v10 }
 0x2a9   :  { %v493_v14 = vrot.slane %v486_v13, %v485_v10 }
 0x2ab   :  { %499 = vst.msk [vmem:[#allocation2] sm:$0x3] %vm497_vm1, %v493_v14 }
 0x2ac   :  { %625 = shalt.err (!%p622_p4)
}
 0x2ad   :  { %s626_s5 = scalar_lea.hbm %s800_s4, 32 }
 0x2ae   :  { %p627_p5 = scmp.ne.s32.totalorder %s800_s4, %s626_s5  ;;  %p630_p6 = scmp.lt.u32.totalorder %s626_s5, %s800_s4 }
 0x2b0   :  { %p632_p7 = pnand %p630_p6, %p627_p5 }
 0x2b2   :  { %635 = shalt.err (!%p632_p7)
}
 0x2b3   :  { %509 = dma.vmem_to_hbm [thread:$0]  %s507_s27, 32, %s800_s4, [#allocation3]  }
 0x2b4   :  { %636 = dma.done.wait [#allocation3], 32  }
 0x2b5   :  { %637 = vsyncadd [#allocation3], 4294967264 }
 0x2b6   :  { %513 = vsyncpa [#allocation3], 1 }

</bundles_post_ra>
